<compile_context>
chip_gen: v7x
topology: tpu7x:2x2x1
jax: 0.10.0
libtpu: 0.0.40
codegen_flags: <defaults>
</compile_context>

<pallas_src>
import jax
import jax.numpy as jnp
from jax.experimental import pallas as pl
from jax.experimental.pallas import tpu as pltpu

INPUT_DIM = 11
EMBED_DIM = 256
C1, C2 = 64, 128
BN_EPS = 1e-5
MATMUL_DTYPE = jnp.bfloat16   # MXU-native; set to jnp.float32 for exact-f32 matmuls.


# --------------------------------------------------------------------------- kernel

def _conv3_taps(hb, w_ref):
    """Conv1d(k=3, padding=1) as three shifted-view MXU matmuls, f32 accumulation.

    hb:    (B, L, Cin)    MATMUL_DTYPE activations (a value, not a ref)
    w_ref: (3, Cin, Cout) MATMUL_DTYPE per-tap weight matrices
    returns (B*L, Cout) f32
    """
    B, L, Cin = hb.shape
    zrow = jnp.zeros((B, 1, Cin), hb.dtype)
    # Tap k=0 sees x[l-1], k=1 sees x[l], k=2 sees x[l+1]; zero padding at both ends.
    hl = jnp.concatenate([zrow, hb[:, :L - 1, :]], axis=1).reshape(B * L, Cin)
    hc = hb.reshape(B * L, Cin)
    hr = jnp.concatenate([hb[:, 1:, :], zrow], axis=1).reshape(B * L, Cin)
    y = jnp.dot(hl, w_ref[0], preferred_element_type=jnp.float32)
    y += jnp.dot(hc, w_ref[1], preferred_element_type=jnp.float32)
    y += jnp.dot(hr, w_ref[2], preferred_element_type=jnp.float32)
    return y


def _bn_relu(y, g_ref, be_ref):
    """Training-mode BatchNorm1d (batch stats over all B*L rows) + ReLU, folded into
    one per-channel scale/shift. Two-pass centered variance in f32 (review concern);
    the conv bias is omitted upstream because the mean subtraction cancels it."""
    mean = jnp.mean(y, axis=0, keepdims=True)                       # (1, Cout)
    var = jnp.mean(jnp.square(y - mean), axis=0, keepdims=True)     # biased, centered
    scale = g_ref[...] * jax.lax.rsqrt(var + BN_EPS)                # (1, Cout)
    shift = be_ref[...] - mean * scale
    return jnp.maximum(y * scale + shift, 0.0)


def lightweight_cnn_kernel(x_ref,
                           w1_ref, g1_ref, be1_ref,
                           w2_ref, g2_ref, be2_ref,
                           w3_ref, g3_ref, be3_ref,
                           out_ref,
                           col3_ref):
    B, L, _ = x_ref.shape

    # ---- layer 1: Conv1d(11 -> 64). Cin lane-misaligned -> shifted-view matmuls ----
    xb = x_ref[...].astype(MATMUL_DTYPE)                       # single cast of x
    y = _conv3_taps(xb, w1_ref)                                # (B*L, 64) f32
    h = _bn_relu(y, g1_ref, be1_ref).astype(MATMUL_DTYPE)      # bf16 inter-layer act
    h = h.reshape(B, L, C1)

    # ---- layer 2: Conv1d(64 -> 128), same scheme ----
    y = _conv3_taps(h, w2_ref)                                 # (B*L, 128) f32
    h = _bn_relu(y, g2_ref, be2_ref).astype(MATMUL_DTYPE)
    h = h.reshape(B, L, C2)

    # ---- layer 3: Conv1d(128 -> 256). Lane-aligned -> single K=384 im2col matmul ----
    # im2col row l = [x[l-1] | x[l] | x[l+1]], built with shifted slice-stores into a
    # bf16 scratch (lane offsets 0/128/256 are aligned; no concatenate copies).
    zrow = jnp.zeros((B, 1, C2), h.dtype)
    col3_ref[:, 1:L, 0:C2] = h[:, :L - 1, :]                   # left tap   x[l-1]
    col3_ref[:, 0:1, 0:C2] = zrow
    col3_ref[:, :, C2:2 * C2] = h                              # center tap x[l]
    col3_ref[:, :L - 1, 2 * C2:3 * C2] = h[:, 1:, :]           # right tap  x[l+1]
    col3_ref[:, L - 1:L, 2 * C2:3 * C2] = zrow
    col = col3_ref[...].reshape(B * L, 3 * C2)
    y = jnp.dot(col, w3_ref[...], preferred_element_type=jnp.float32)  # (B*L, 256)

    # BN3 + ReLU in f32, then AdaptiveAvgPool1d(1) over L with f32 accumulation.
    h3 = _bn_relu(y, g3_ref, be3_ref).reshape(B, L, EMBED_DIM)
    out_ref[...] = jnp.mean(h3, axis=1)                        # (B, 256), lane-dense


# ------------------------------------------------------------------------- wrapper

def _vmem_limit_bytes():
    """Generation-aware scoped-VMEM limit: ~3/4 of physical VMEM capped at 100 MiB
    (~96 MiB on 128 MiB v5e/v6e, ~48 MiB on 64 MiB v7x); conservative 32 MiB fallback."""
    try:
        cap = pltpu.get_tpu_info().vmem_capacity_bytes
    except Exception:
        return 32 * 1024 * 1024
    return int(min(cap * 3 // 4, 100 * 1024 * 1024))


@jax.jit
def lightweight_cnn_forward(x, kparams):
    """x: (B, seq_len, INPUT_DIM) f32 -> (B, EMBED_DIM) f32 (training-mode BN).

    `kparams` must come from pack_kernel_params (weights pre-fused and pre-cast to
    MATMUL_DTYPE once, hoisted out of the per-step forward)."""
    B, L, _ = x.shape
    args = (
        x,
        kparams["w1"], kparams["g1"], kparams["be1"],
        kparams["w2"], kparams["g2"], kparams["be2"],
        kparams["w3"], kparams["g3"], kparams["be3"],
    )
    vmem = pl.BlockSpec(memory_space=pltpu.MemorySpace.VMEM)
    return pl.pallas_call(
        lightweight_cnn_kernel,
        out_shape=jax.ShapeDtypeStruct((B, EMBED_DIM), jnp.float32),
        in_specs=[vmem] * len(args),
        out_specs=vmem,
        scratch_shapes=[
            pltpu.VMEM((B, L, 3 * C2), MATMUL_DTYPE),   # layer-3 im2col, bf16
        ],
        compiler_params=pltpu.CompilerParams(
            vmem_limit_bytes=_vmem_limit_bytes()),
    )(*args)


# -------------------------------------------------------------------------- params

def init_params(key):
    """Deterministic synthetic parameters in PyTorch layouts (f32 master copies).

    Conv1d weight: (Cout, Cin, 3); bias (1, Cout) -- kept only for the reference (the
    kernel drops conv bias: dead under training-mode BN). BN: gamma=1, beta=0 (fresh
    nn.BatchNorm1d defaults); running stats are irrelevant in training mode."""
    ks = jax.random.split(key, 6)

    def conv_w(k, cin, cout):
        return jax.random.normal(k, (cout, cin, 3), jnp.float32) * 0.1

    def conv_b(k, cout):
        return jax.random.normal(k, (1, cout), jnp.float32) * 0.05

    return {
        "w1": conv_w(ks[0], INPUT_DIM, C1), "b1": conv_b(ks[1], C1),
        "g1": jnp.ones((1, C1), jnp.float32), "be1": jnp.zeros((1, C1), jnp.float32),
        "w2": conv_w(ks[2], C1, C2), "b2": conv_b(ks[3], C2),
        "g2": jnp.ones((1, C2), jnp.float32), "be2": jnp.zeros((1, C2), jnp.float32),
        "w3": conv_w(ks[4], C2, EMBED_DIM), "b3": conv_b(ks[5], EMBED_DIM),
        "g3": jnp.ones((1, EMBED_DIM), jnp.float32),
        "be3": jnp.zeros((1, EMBED_DIM), jnp.float32),
    }


def pack_kernel_params(params):
    """One-time weight repack + MATMUL_DTYPE cast (hoisted out of the jit'd forward).

    Layers 1-2: (Cout, Cin, 3) -> (3, Cin, Cout) per-tap matrices (shifted-view
    matmuls). Layer 3: taps fused along K -> (3*Cin, Cout) for the single im2col
    matmul; row index k*Cin + i  <->  torch w[o, i, k]."""
    def taps(w):
        return jnp.transpose(w, (2, 1, 0)).astype(MATMUL_DTYPE)      # (3, Cin, Cout)

    def fused(w):
        cout, cin, _ = w.shape
        return jnp.transpose(w, (2, 1, 0)).reshape(3 * cin, cout).astype(MATMUL_DTYPE)

    return {
        "w1": taps(params["w1"]), "g1": params["g1"], "be1": params["be1"],
        "w2": taps(params["w2"]), "g2": params["g2"], "be2": params["be2"],
        "w3": fused(params["w3"]), "g3": params["g3"], "be3": params["be3"],
    }


# ----------------------------------------------------------------------- reference

def reference_forward(x, params, matmul_dtype=jnp.float32):
    """Pure-JAX reference mirroring the PyTorch forward (training-mode BN).

    `matmul_dtype` controls the dtype the conv-matmul operands are rounded to, so the
    kernel (bf16 operands/activations, f32 accumulation) can be checked both against
    matched numerics and against exact-f32 math."""
    def block(h, w, b, g, be):                        # w: (Cout, Cin, 3) torch layout
        B, L, Cin = h.shape
        zero = jnp.zeros((B, 1, Cin), h.dtype)
        hl = jnp.concatenate([zero, h[:, :-1, :]], axis=1)   # x[l-1]
        hr = jnp.concatenate([h[:, 1:, :], zero], axis=1)    # x[l+1]

        def mm(a, k):
            wk = w[:, :, k].T                                 # (Cin, Cout)
            return jnp.einsum("blc,co->blo",
                              a.astype(matmul_dtype), wk.astype(matmul_dtype),
                              precision=jax.lax.Precision.HIGHEST,
                              preferred_element_type=jnp.float32)

        y = mm(hl, 0) + mm(h, 1) + mm(hr, 2) + b[None]
        mean = jnp.mean(y, axis=(0, 1), keepdims=True)
        var = jnp.mean((y - mean) ** 2, axis=(0, 1), keepdims=True)   # biased var
        y = (y - mean) / jnp.sqrt(var + BN_EPS) * g[None] + be[None]
        return jnp.maximum(y, 0.0)

    h = block(x, params["w1"], params["b1"], params["g1"], params["be1"])
    h = block(h, params["w2"], params["b2"], params["g2"], params["be2"])
    h = block(h, params["w3"], params["b3"], params["g3"], params["be3"])
    return jnp.mean(h, axis=1)


if __name__ == "__main__":
    key = jax.random.PRNGKey(0)
    k_x, k_p = jax.random.split(key)

    B, SEQ = 2, 16
    x = jax.random.normal(k_x, (B, SEQ, INPUT_DIM), jnp.float32)
    params = init_params(k_p)
    kparams = pack_kernel_params(params)        # one-time repack + bf16 cast

    out = jax.block_until_ready(lightweight_cnn_forward(x, kparams))
    assert out.shape == (B, EMBED_DIM) and out.dtype == jnp.float32

    # Tight check against a reference matching the kernel's matmul numerics
    # (bf16 operands, f32 accumulation).
    ref_matched = jax.block_until_ready(reference_forward(x, params, MATMUL_DTYPE))
    assert jnp.allclose(out, ref_matched, atol=2e-2, rtol=2e-2), \
        "mismatch vs numerics-matched reference"

    # Loose sanity check against exact-f32 math: bf16 rounding gives ~1e-2-level
    # error, whereas a real bug (wrong tap order / weight layout) is O(1).
    ref_f32 = jax.block_until_ready(reference_forward(x, params, jnp.float32))
    assert jnp.allclose(out, ref_f32, atol=1e-1, rtol=1e-1), \
        "mismatch vs exact-f32 reference"

    print("KERNEL_OK")
</pallas_src>

<mosaic_0001>
module attributes {stable_mosaic.version = 11 : i64} {
  func.func @lightweight_cnn_kernel(%arg0: memref<2x16x11xf32, #tpu.memory_space<vmem>>, %arg1: memref<3x11x64xbf16, #tpu.memory_space<vmem>>, %arg2: memref<1x64xf32, #tpu.memory_space<vmem>>, %arg3: memref<1x64xf32, #tpu.memory_space<vmem>>, %arg4: memref<3x64x128xbf16, #tpu.memory_space<vmem>>, %arg5: memref<1x128xf32, #tpu.memory_space<vmem>>, %arg6: memref<1x128xf32, #tpu.memory_space<vmem>>, %arg7: memref<384x256xbf16, #tpu.memory_space<vmem>>, %arg8: memref<1x256xf32, #tpu.memory_space<vmem>>, %arg9: memref<1x256xf32, #tpu.memory_space<vmem>>, %arg10: memref<2x256xf32, #tpu.memory_space<vmem>>, %arg11: memref<2x16x384xbf16, #tpu.memory_space<vmem>>) attributes {dimension_semantics = [], scalar_prefetch = 0 : i64, scratch_operands = 1 : i64, tpu.core_type = #tpu.core_type<tc>} {
    %c0 = arith.constant 0 : index
    %c0_0 = arith.constant 0 : index
    %c0_1 = arith.constant 0 : index
    %0 = vector.load %arg0[%c0, %c0_0, %c0_1] : memref<2x16x11xf32, #tpu.memory_space<vmem>>, vector<2x16x11xf32>
    %1 = arith.truncf %0 : vector<2x16x11xf32> to vector<2x16x11xbf16>
    %cst = arith.constant 0.000000e+00 : bf16
    %2 = vector.broadcast %cst : bf16 to vector<2x1x11xbf16>
    %3 = vector.extract_strided_slice %1 {offsets = [0, 0, 0], sizes = [2, 15, 11], strides = [1, 1, 1]} : vector<2x16x11xbf16> to vector<2x15x11xbf16>
    %4 = tpu.concatenate %2, %3 in 1 : vector<2x1x11xbf16>, vector<2x15x11xbf16> -> vector<2x16x11xbf16>
    %5 = vector.shape_cast %4 : vector<2x16x11xbf16> to vector<32x11xbf16>
    %6 = vector.shape_cast %1 : vector<2x16x11xbf16> to vector<32x11xbf16>
    %7 = vector.extract_strided_slice %1 {offsets = [0, 1, 0], sizes = [2, 15, 11], strides = [1, 1, 1]} : vector<2x16x11xbf16> to vector<2x15x11xbf16>
    %8 = tpu.concatenate %7, %2 in 1 : vector<2x15x11xbf16>, vector<2x1x11xbf16> -> vector<2x16x11xbf16>
    %9 = vector.shape_cast %8 : vector<2x16x11xbf16> to vector<32x11xbf16>
    %c0_2 = arith.constant 0 : index
    %c0_3 = arith.constant 0 : index
    %c0_4 = arith.constant 0 : index
    %10 = vector.load %arg1[%c0_2, %c0_3, %c0_4] : memref<3x11x64xbf16, #tpu.memory_space<vmem>>, vector<1x11x64xbf16>
    %11 = vector.shape_cast %10 : vector<1x11x64xbf16> to vector<11x64xbf16>
    %cst_5 = arith.constant dense<0.000000e+00> : vector<32x64xf32>
    %12 = tpu.matmul %5, %11, %cst_5 {dimension_numbers = #tpu.dot_dimension_numbers<[1], [0], [0], [1], [0, 0, 1, 1], [], []>} : vector<32x11xbf16>, vector<11x64xbf16>, vector<32x64xf32> -> vector<32x64xf32>
    %c1 = arith.constant 1 : index
    %c0_6 = arith.constant 0 : index
    %c0_7 = arith.constant 0 : index
    %13 = vector.load %arg1[%c1, %c0_6, %c0_7] : memref<3x11x64xbf16, #tpu.memory_space<vmem>>, vector<1x11x64xbf16>
    %14 = vector.shape_cast %13 : vector<1x11x64xbf16> to vector<11x64xbf16>
    %cst_8 = arith.constant dense<0.000000e+00> : vector<32x64xf32>
    %15 = tpu.matmul %6, %14, %cst_8 {dimension_numbers = #tpu.dot_dimension_numbers<[1], [0], [0], [1], [0, 0, 1, 1], [], []>} : vector<32x11xbf16>, vector<11x64xbf16>, vector<32x64xf32> -> vector<32x64xf32>
    %16 = arith.addf %12, %15 : vector<32x64xf32>
    %c2 = arith.constant 2 : index
    %c0_9 = arith.constant 0 : index
    %c0_10 = arith.constant 0 : index
    %17 = vector.load %arg1[%c2, %c0_9, %c0_10] : memref<3x11x64xbf16, #tpu.memory_space<vmem>>, vector<1x11x64xbf16>
    %18 = vector.shape_cast %17 : vector<1x11x64xbf16> to vector<11x64xbf16>
    %cst_11 = arith.constant dense<0.000000e+00> : vector<32x64xf32>
    %19 = tpu.matmul %9, %18, %cst_11 {dimension_numbers = #tpu.dot_dimension_numbers<[1], [0], [0], [1], [0, 0, 1, 1], [], []>} : vector<32x11xbf16>, vector<11x64xbf16>, vector<32x64xf32> -> vector<32x64xf32>
    %20 = arith.addf %16, %19 : vector<32x64xf32>
    %cst_12 = arith.constant dense<0.000000e+00> : vector<64xf32>
    %21 = vector.multi_reduction <add>, %20, %cst_12 [0] : vector<32x64xf32> to vector<64xf32>
    %22 = vector.shape_cast %21 : vector<64xf32> to vector<1x64xf32>
    %cst_13 = arith.constant 3.200000e+01 : f32
    %23 = vector.broadcast %cst_13 : f32 to vector<1x64xf32>
    %24 = arith.divf %22, %23 : vector<1x64xf32>
    %25 = vector.broadcast %24 : vector<1x64xf32> to vector<32x64xf32>
    %26 = arith.subf %20, %25 : vector<32x64xf32>
    %27 = arith.mulf %26, %26 : vector<32x64xf32>
    %cst_14 = arith.constant dense<0.000000e+00> : vector<64xf32>
    %28 = vector.multi_reduction <add>, %27, %cst_14 [0] : vector<32x64xf32> to vector<64xf32>
    %29 = vector.shape_cast %28 : vector<64xf32> to vector<1x64xf32>
    %cst_15 = arith.constant 3.200000e+01 : f32
    %30 = vector.broadcast %cst_15 : f32 to vector<1x64xf32>
    %31 = arith.divf %29, %30 : vector<1x64xf32>
    %c0_16 = arith.constant 0 : index
    %c0_17 = arith.constant 0 : index
    %32 = vector.load %arg2[%c0_16, %c0_17] : memref<1x64xf32, #tpu.memory_space<vmem>>, vector<1x64xf32>
    %cst_18 = arith.constant 9.99999974E-6 : f32
    %33 = vector.broadcast %cst_18 : f32 to vector<1x64xf32>
    %34 = arith.addf %31, %33 : vector<1x64xf32>
    %35 = math.rsqrt %34 : vector<1x64xf32>
    %36 = arith.mulf %32, %35 : vector<1x64xf32>
    %c0_19 = arith.constant 0 : index
    %c0_20 = arith.constant 0 : index
    %37 = vector.load %arg3[%c0_19, %c0_20] : memref<1x64xf32, #tpu.memory_space<vmem>>, vector<1x64xf32>
    %38 = arith.mulf %24, %36 : vector<1x64xf32>
    %39 = arith.subf %37, %38 : vector<1x64xf32>
    %40 = vector.broadcast %36 : vector<1x64xf32> to vector<32x64xf32>
    %41 = arith.mulf %20, %40 : vector<32x64xf32>
    %42 = vector.broadcast %39 : vector<1x64xf32> to vector<32x64xf32>
    %43 = arith.addf %41, %42 : vector<32x64xf32>
    %cst_21 = arith.constant 0.000000e+00 : f32
    %44 = vector.broadcast %cst_21 : f32 to vector<32x64xf32>
    %45 = arith.maximumf %43, %44 : vector<32x64xf32>
    %46 = arith.truncf %45 : vector<32x64xf32> to vector<32x64xbf16>
    %47 = vector.shape_cast %46 : vector<32x64xbf16> to vector<2x16x64xbf16>
    %cst_22 = arith.constant 0.000000e+00 : bf16
    %48 = vector.broadcast %cst_22 : bf16 to vector<2x1x64xbf16>
    %49 = vector.extract_strided_slice %47 {offsets = [0, 0, 0], sizes = [2, 15, 64], strides = [1, 1, 1]} : vector<2x16x64xbf16> to vector<2x15x64xbf16>
    %50 = tpu.concatenate %48, %49 in 1 : vector<2x1x64xbf16>, vector<2x15x64xbf16> -> vector<2x16x64xbf16>
    %51 = vector.shape_cast %50 : vector<2x16x64xbf16> to vector<32x64xbf16>
    %52 = vector.shape_cast %47 : vector<2x16x64xbf16> to vector<32x64xbf16>
    %53 = vector.extract_strided_slice %47 {offsets = [0, 1, 0], sizes = [2, 15, 64], strides = [1, 1, 1]} : vector<2x16x64xbf16> to vector<2x15x64xbf16>
    %54 = tpu.concatenate %53, %48 in 1 : vector<2x15x64xbf16>, vector<2x1x64xbf16> -> vector<2x16x64xbf16>
    %55 = vector.shape_cast %54 : vector<2x16x64xbf16> to vector<32x64xbf16>
    %c0_23 = arith.constant 0 : index
    %c0_24 = arith.constant 0 : index
    %c0_25 = arith.constant 0 : index
    %56 = vector.load %arg4[%c0_23, %c0_24, %c0_25] : memref<3x64x128xbf16, #tpu.memory_space<vmem>>, vector<1x64x128xbf16>
    %57 = vector.shape_cast %56 : vector<1x64x128xbf16> to vector<64x128xbf16>
    %cst_26 = arith.constant dense<0.000000e+00> : vector<32x128xf32>
    %58 = tpu.matmul %51, %57, %cst_26 {dimension_numbers = #tpu.dot_dimension_numbers<[1], [0], [0], [1], [0, 0, 1, 1], [], []>} : vector<32x64xbf16>, vector<64x128xbf16>, vector<32x128xf32> -> vector<32x128xf32>
    %c1_27 = arith.constant 1 : index
    %c0_28 = arith.constant 0 : index
    %c0_29 = arith.constant 0 : index
    %59 = vector.load %arg4[%c1_27, %c0_28, %c0_29] : memref<3x64x128xbf16, #tpu.memory_space<vmem>>, vector<1x64x128xbf16>
    %60 = vector.shape_cast %59 : vector<1x64x128xbf16> to vector<64x128xbf16>
    %cst_30 = arith.constant dense<0.000000e+00> : vector<32x128xf32>
    %61 = tpu.matmul %52, %60, %cst_30 {dimension_numbers = #tpu.dot_dimension_numbers<[1], [0], [0], [1], [0, 0, 1, 1], [], []>} : vector<32x64xbf16>, vector<64x128xbf16>, vector<32x128xf32> -> vector<32x128xf32>
    %62 = arith.addf %58, %61 : vector<32x128xf32>
    %c2_31 = arith.constant 2 : index
    %c0_32 = arith.constant 0 : index
    %c0_33 = arith.constant 0 : index
    %63 = vector.load %arg4[%c2_31, %c0_32, %c0_33] : memref<3x64x128xbf16, #tpu.memory_space<vmem>>, vector<1x64x128xbf16>
    %64 = vector.shape_cast %63 : vector<1x64x128xbf16> to vector<64x128xbf16>
    %cst_34 = arith.constant dense<0.000000e+00> : vector<32x128xf32>
    %65 = tpu.matmul %55, %64, %cst_34 {dimension_numbers = #tpu.dot_dimension_numbers<[1], [0], [0], [1], [0, 0, 1, 1], [], []>} : vector<32x64xbf16>, vector<64x128xbf16>, vector<32x128xf32> -> vector<32x128xf32>
    %66 = arith.addf %62, %65 : vector<32x128xf32>
    %cst_35 = arith.constant dense<0.000000e+00> : vector<128xf32>
    %67 = vector.multi_reduction <add>, %66, %cst_35 [0] : vector<32x128xf32> to vector<128xf32>
    %68 = vector.shape_cast %67 : vector<128xf32> to vector<1x128xf32>
    %cst_36 = arith.constant 3.200000e+01 : f32
    %69 = vector.broadcast %cst_36 : f32 to vector<1x128xf32>
    %70 = arith.divf %68, %69 : vector<1x128xf32>
    %71 = vector.broadcast %70 : vector<1x128xf32> to vector<32x128xf32>
    %72 = arith.subf %66, %71 : vector<32x128xf32>
    %73 = arith.mulf %72, %72 : vector<32x128xf32>
    %cst_37 = arith.constant dense<0.000000e+00> : vector<128xf32>
    %74 = vector.multi_reduction <add>, %73, %cst_37 [0] : vector<32x128xf32> to vector<128xf32>
    %75 = vector.shape_cast %74 : vector<128xf32> to vector<1x128xf32>
    %cst_38 = arith.constant 3.200000e+01 : f32
    %76 = vector.broadcast %cst_38 : f32 to vector<1x128xf32>
    %77 = arith.divf %75, %76 : vector<1x128xf32>
    %c0_39 = arith.constant 0 : index
    %c0_40 = arith.constant 0 : index
    %78 = vector.load %arg5[%c0_39, %c0_40] : memref<1x128xf32, #tpu.memory_space<vmem>>, vector<1x128xf32>
    %cst_41 = arith.constant 9.99999974E-6 : f32
    %79 = vector.broadcast %cst_41 : f32 to vector<1x128xf32>
    %80 = arith.addf %77, %79 : vector<1x128xf32>
    %81 = math.rsqrt %80 : vector<1x128xf32>
    %82 = arith.mulf %78, %81 : vector<1x128xf32>
    %c0_42 = arith.constant 0 : index
    %c0_43 = arith.constant 0 : index
    %83 = vector.load %arg6[%c0_42, %c0_43] : memref<1x128xf32, #tpu.memory_space<vmem>>, vector<1x128xf32>
    %84 = arith.mulf %70, %82 : vector<1x128xf32>
    %85 = arith.subf %83, %84 : vector<1x128xf32>
    %86 = vector.broadcast %82 : vector<1x128xf32> to vector<32x128xf32>
    %87 = arith.mulf %66, %86 : vector<32x128xf32>
    %88 = vector.broadcast %85 : vector<1x128xf32> to vector<32x128xf32>
    %89 = arith.addf %87, %88 : vector<32x128xf32>
    %cst_44 = arith.constant 0.000000e+00 : f32
    %90 = vector.broadcast %cst_44 : f32 to vector<32x128xf32>
    %91 = arith.maximumf %89, %90 : vector<32x128xf32>
    %92 = arith.truncf %91 : vector<32x128xf32> to vector<32x128xbf16>
    %93 = vector.shape_cast %92 : vector<32x128xbf16> to vector<2x16x128xbf16>
    %cst_45 = arith.constant 0.000000e+00 : bf16
    %94 = vector.broadcast %cst_45 : bf16 to vector<2x1x128xbf16>
    %95 = vector.extract_strided_slice %93 {offsets = [0, 0, 0], sizes = [2, 15, 128], strides = [1, 1, 1]} : vector<2x16x128xbf16> to vector<2x15x128xbf16>
    %c0_46 = arith.constant 0 : index
    %c1_47 = arith.constant 1 : index
    %c0_48 = arith.constant 0 : index
    %96 = vector.load %arg11[%c0_46, %c1_47, %c0_48] : memref<2x16x384xbf16, #tpu.memory_space<vmem>>, vector<2x15x128xbf16>
    tpu.vector_store %arg11[%c0_46, %c1_47, %c0_48], %95 {strides = array<i32>} : memref<2x16x384xbf16, #tpu.memory_space<vmem>>, vector<2x15x128xbf16>,
    %c0_49 = arith.constant 0 : index
    %c0_50 = arith.constant 0 : index
    %c0_51 = arith.constant 0 : index
    %97 = vector.load %arg11[%c0_49, %c0_50, %c0_51] : memref<2x16x384xbf16, #tpu.memory_space<vmem>>, vector<2x1x128xbf16>
    tpu.vector_store %arg11[%c0_49, %c0_50, %c0_51], %94 {strides = array<i32>} : memref<2x16x384xbf16, #tpu.memory_space<vmem>>, vector<2x1x128xbf16>,
    %c0_52 = arith.constant 0 : index
    %c0_53 = arith.constant 0 : index
    %c128 = arith.constant 128 : index
    %98 = vector.load %arg11[%c0_52, %c0_53, %c128] : memref<2x16x384xbf16, #tpu.memory_space<vmem>>, vector<2x16x128xbf16>
    tpu.vector_store %arg11[%c0_52, %c0_53, %c128], %93 {strides = array<i32>} : memref<2x16x384xbf16, #tpu.memory_space<vmem>>, vector<2x16x128xbf16>,
    %99 = vector.extract_strided_slice %93 {offsets = [0, 1, 0], sizes = [2, 15, 128], strides = [1, 1, 1]} : vector<2x16x128xbf16> to vector<2x15x128xbf16>
    %c0_54 = arith.constant 0 : index
    %c0_55 = arith.constant 0 : index
    %c256 = arith.constant 256 : index
    %100 = vector.load %arg11[%c0_54, %c0_55, %c256] : memref<2x16x384xbf16, #tpu.memory_space<vmem>>, vector<2x15x128xbf16>
    tpu.vector_store %arg11[%c0_54, %c0_55, %c256], %99 {strides = array<i32>} : memref<2x16x384xbf16, #tpu.memory_space<vmem>>, vector<2x15x128xbf16>,
    %c0_56 = arith.constant 0 : index
    %c15 = arith.constant 15 : index
    %c256_57 = arith.constant 256 : index
    %101 = vector.load %arg11[%c0_56, %c15, %c256_57] : memref<2x16x384xbf16, #tpu.memory_space<vmem>>, vector<2x1x128xbf16>
    tpu.vector_store %arg11[%c0_56, %c15, %c256_57], %94 {strides = array<i32>} : memref<2x16x384xbf16, #tpu.memory_space<vmem>>, vector<2x1x128xbf16>,
    %c0_58 = arith.constant 0 : index
    %c0_59 = arith.constant 0 : index
    %c0_60 = arith.constant 0 : index
    %102 = vector.load %arg11[%c0_58, %c0_59, %c0_60] : memref<2x16x384xbf16, #tpu.memory_space<vmem>>, vector<2x16x384xbf16>
    %103 = vector.shape_cast %102 : vector<2x16x384xbf16> to vector<32x384xbf16>
    %c0_61 = arith.constant 0 : index
    %c0_62 = arith.constant 0 : index
    %104 = vector.load %arg7[%c0_61, %c0_62] : memref<384x256xbf16, #tpu.memory_space<vmem>>, vector<384x256xbf16>
    %cst_63 = arith.constant dense<0.000000e+00> : vector<32x256xf32>
    %105 = tpu.matmul %103, %104, %cst_63 {dimension_numbers = #tpu.dot_dimension_numbers<[1], [0], [0], [1], [0, 0, 1, 1], [], []>} : vector<32x384xbf16>, vector<384x256xbf16>, vector<32x256xf32> -> vector<32x256xf32>
    %cst_64 = arith.constant dense<0.000000e+00> : vector<256xf32>
    %106 = vector.multi_reduction <add>, %105, %cst_64 [0] : vector<32x256xf32> to vector<256xf32>
    %107 = vector.shape_cast %106 : vector<256xf32> to vector<1x256xf32>
    %cst_65 = arith.constant 3.200000e+01 : f32
    %108 = vector.broadcast %cst_65 : f32 to vector<1x256xf32>
    %109 = arith.divf %107, %108 : vector<1x256xf32>
    %110 = vector.broadcast %109 : vector<1x256xf32> to vector<32x256xf32>
    %111 = arith.subf %105, %110 : vector<32x256xf32>
    %112 = arith.mulf %111, %111 : vector<32x256xf32>
    %cst_66 = arith.constant dense<0.000000e+00> : vector<256xf32>
    %113 = vector.multi_reduction <add>, %112, %cst_66 [0] : vector<32x256xf32> to vector<256xf32>
    %114 = vector.shape_cast %113 : vector<256xf32> to vector<1x256xf32>
    %cst_67 = arith.constant 3.200000e+01 : f32
    %115 = vector.broadcast %cst_67 : f32 to vector<1x256xf32>
    %116 = arith.divf %114, %115 : vector<1x256xf32>
    %c0_68 = arith.constant 0 : index
    %c0_69 = arith.constant 0 : index
    %117 = vector.load %arg8[%c0_68, %c0_69] : memref<1x256xf32, #tpu.memory_space<vmem>>, vector<1x256xf32>
    %cst_70 = arith.constant 9.99999974E-6 : f32
    %118 = vector.broadcast %cst_70 : f32 to vector<1x256xf32>
    %119 = arith.addf %116, %118 : vector<1x256xf32>
    %120 = math.rsqrt %119 : vector<1x256xf32>
    %121 = arith.mulf %117, %120 : vector<1x256xf32>
    %c0_71 = arith.constant 0 : index
    %c0_72 = arith.constant 0 : index
    %122 = vector.load %arg9[%c0_71, %c0_72] : memref<1x256xf32, #tpu.memory_space<vmem>>, vector<1x256xf32>
    %123 = arith.mulf %109, %121 : vector<1x256xf32>
    %124 = arith.subf %122, %123 : vector<1x256xf32>
    %125 = vector.broadcast %121 : vector<1x256xf32> to vector<32x256xf32>
    %126 = arith.mulf %105, %125 : vector<32x256xf32>
    %127 = vector.broadcast %124 : vector<1x256xf32> to vector<32x256xf32>
    %128 = arith.addf %126, %127 : vector<32x256xf32>
    %cst_73 = arith.constant 0.000000e+00 : f32
    %129 = vector.broadcast %cst_73 : f32 to vector<32x256xf32>
    %130 = arith.maximumf %128, %129 : vector<32x256xf32>
    %131 = vector.shape_cast %130 : vector<32x256xf32> to vector<2x16x256xf32>
    %cst_74 = arith.constant dense<0.000000e+00> : vector<2x256xf32>
    %132 = vector.multi_reduction <add>, %131, %cst_74 [1] : vector<2x16x256xf32> to vector<2x256xf32>
    %cst_75 = arith.constant 1.600000e+01 : f32
    %133 = vector.broadcast %cst_75 : f32 to vector<2x256xf32>
    %134 = arith.divf %132, %133 : vector<2x256xf32>
    %c0_76 = arith.constant 0 : index
    %c0_77 = arith.constant 0 : index
    %135 = vector.load %arg10[%c0_76, %c0_77] : memref<2x256xf32, #tpu.memory_space<vmem>>, vector<2x256xf32>
    tpu.vector_store %arg10[%c0_76, %c0_77], %134 {strides = array<i32>} : memref<2x256xf32, #tpu.memory_space<vmem>>, vector<2x256xf32>,
    return
  }
}

</mosaic_0001>

<bundles_post_ra>
// kernel: lightweight_cnn_forward.1
= control target key start
LH: loop header
LB: loop body
LE: loop exit
PB: predicated region body
PF: predicated region fallthrough
CT: control target
= control target key end

     0   :  { %15 = vsyncpa [#allocation4], 0  ;;  %s2040_s0 = inlined_call_operand.vmem [shape: f32[2,16,11], index: 0, kind: input, shape index: {}]   ;;  %s2041_s1 = inlined_call_operand.vmem [shape: bf16[3,11,64], index: 1, kind: input, shape index: {}]   ;;  %s2042_s2 = inlined_call_operand.vmem [shape: f32[1,64], index: 2, kind: input, shape index: {}]   ;;  %s2043_s3 = inlined_call_operand.vmem [shape: f32[1,64], index: 3, kind: input, shape index: {}]   ;;  %s2044_s4 = inlined_call_operand.vmem [shape: bf16[3,64,128], index: 4, kind: input, shape index: {}]   ;;  %s2045_s5 = inlined_call_operand.vmem [shape: f32[1,128], index: 5, kind: input, shape index: {}]   ;;  %s2046_s6 = inlined_call_operand.vmem [shape: f32[1,128], index: 6, kind: input, shape index: {}]   ;;  %s2047_s7 = inlined_call_operand.hbm [shape: bf16[384,256], index: 7, kind: input, shape index: {}]   ;;  %s2048_s8 = inlined_call_operand.vmem [shape: f32[1,256], index: 8, kind: input, shape index: {}]   ;;  %s2049_s9 = inlined_call_operand.vmem [shape: f32[1,256], index: 9, kind: input, shape index: {}]   ;;  %s2050_s10 = inlined_call_operand.hbm [shape: f32[2,256], index: 10, kind: output, shape index: {}]  }
   0x1   :  { %16 = vsyncpa [#allocation5], 0  ;;  %s1751_s13 = smov [#allocation3]   ;;  %s1703_s17 = scalar_lea.hbm %s2047_s7, 6144 }
   0x2   :  { %s36_s14 = sshll.u32 %s1751_s13, 4  ;;  %p1704_p0 = scmp.ne.s32.totalorder %s2047_s7, %s1703_s17  ;;  %s37_s14 = int_to_ptr.vmem [resolvable:$true] %s36_s14 }
   0x3   :  { %p1707_p1 = scmp.lt.u32.totalorder %s1703_s17, %s2047_s7 }
   0x5   :  { %p1709_p2 = pnand %p1707_p1, %p1704_p0 }
   0x7   :  { %1712 = shalt.err (!%p1709_p2)
}
   0x8   :  { %s1713_s22 = scalar_lea.vmem %s37_s14, 6144  ;;  %p1718_p4 = scmp.lt.s32.totalorder %s37_s14, %s37_s14 }
   0x9   :  { %p1714_p3 = scmp.ne.s32.totalorder %s37_s14, %s1713_s22  ;;  %p1719_p5 = scmp.lt.s32.totalorder %s1713_s22, %s1713_s22 }
   0xb   :  { %p1720_p6 = por %p1719_p5, %p1718_p4 }
   0xd   :  { %p1721_p7 = pnand %p1720_p6, %p1714_p3 }
   0xf   :  { %1724 = shalt.err (!%p1721_p7)
}
  0x10   :  { %s1752_s23 = smov 128   ;;  %s1753_s24 = smov 8  }
  0x11   :  { %42 = dma.hbm_to_vmem [thread:$0]  %s2047_s7, 6144, %s37_s14, [#allocation4], %s1752_s23, %s1752_s23, %s1753_s24  }
  0x12   :  { %1747 = dma.done.wait [#allocation4], 6144  }
  0x13   :  { %1748 = vsyncadd [#allocation4], 4294961152  ;;  %vm104_vm0 = vcmask 1044480   ;;  %vm105_vm1 = vcmask 1045504   ;;  %v1754_v0 = vmov 65535   ;;  %v51_v4 = vld [vmem:[%s2040_s0] sm:$0xff] }
  0x14   :  { %v106_v1 = vsel %vm104_vm0, 4294967295, %v1754_v0  ;;  %vm74_vm2 = vsmask.f32 256  ;;  %v1608_v3 = vld [vmem:[%s2041_s1 + $0x8] sm:$0x3f]   ;;  %vm99_vm3 = vcmask 89088  }
  0x15   :  { %v107_v2 = vsel %vm105_vm1, %v106_v1, 0  ;;  %v52_v5 = vld [vmem:[%s2040_s0 + $0x8] sm:$0xff]  ;;  %v53_v6 = vld [vmem:[%s2040_s0 + $0x10] sm:$0xff]  ;;  %vm85_vm4 = vsmask.f32 7424  ;;  %v54_v9 = vld [vmem:[%s2040_s0 + $0x18] sm:$0xff] }
  0x16   :  { %v109_v7 = vand.u32 %v1608_v3, %v107_v2  ;;  %v55_v8 = vpack.c.bf16 %v52_v5, %v51_v4  ;;  %vm73_vm5 = vcmask 1040384   ;;  %v56_v10 = vpack.c.bf16 %v54_v9, %v53_v6  ;;  %v1609_v11 = vld [vmem:[%s2041_s1] sm:$0x3f]   ;;  %v1610_v14 = vld [vmem:[%s2041_s1 + $0x10] sm:$0x3f]   ;;  %v1612_v34 = vld [vmem:[%s2044_s4 + $0x28] sm:$0xff]  }
  0x17   :  { %v172_v15 = vand.u32 %v1609_v11, %v107_v2  ;;  %v238_v18 = vand.u32 %v1610_v14, %v107_v2  ;;  %vm84_vm6 = vcmask 1047552   ;;  %vm1850_vm7 = vmand %vm73_vm5, %vm74_vm2  ;;  %v1611_v33 = vld [vmem:[%s2044_s4 + $0x20] sm:$0xff]   ;;  %v1613_v35 = vld [vmem:[%s2044_s4 + $0x30] sm:$0xff]   ;;  %vm293_vm9 = vcmask 523264  }
  0x18   :  { %1522 = vmatprep.subr.bf16.mxu0 %v109_v7  ;;  %v58_v12 = vshrl.u32 %v55_v8, 16  ;;  %1524 = vmatprep.mubr.msk.bf16.mxu0 %vm99_vm3, %v55_v8  ;;  %v61_v13 = vshll.u32 %v55_v8, 16  ;;  %v65_v16 = vshrl.u32 %v56_v10, 16  ;;  %v68_v21 = vshll.u32 %v56_v10, 16  ;;  %vm1860_vm8 = vmand %vm84_vm6, %vm85_vm4  ;;  %v1614_v36 = vld [vmem:[%s2044_s4 + $0x38] sm:$0xff]   ;;  %v1888_v37 = vld [vmem:[%s2044_s4] sm:$0xff]  }
  0x19   :  { %1523 = vmatpush3.bf16.msra.mxu0 %v109_v7  ;;  %1540 = vmatprep.subr.bf16.mxu1 %v1611_v33  ;;  %vm732_vm10 = vsmask.f32 7938  ;;  %vm760_vm12 = vcmask 1047559   ;;  %vm761_vm13 = vsmask.f32 7966  ;;  %vm1375_vm15 = vcmask 1041409  }
  0x1a   :  { %v60_v17 = vrot.slane %v58_v12, 7  ;;  %1528 = vmatprep.subr.bf16.mxu0 %v172_v15  ;;  %v67_v20 = vrot.slane %v65_v16, 7  ;;  %v78_v24 = vrot.slane %v61_v13, 1  ;;  %v80_v30 = vrot.slane %v68_v21, 1  ;;  %1541 = vmatpush3.bf16.msra.mxu1 %v1611_v33  ;;  %vm1958_vm11 = vmand %vm84_vm6, %vm732_vm10 }
  0x1b   :  { %1542 = vmatprep.subr.bf16.mxu1 %v1612_v34  ;;  %vm762_vm14 = vmand %vm760_vm12, %vm761_vm13  ;;  %vm1377_vm0 = vcmask 1043459   ;;  %vm1379_vm1 = vcmask 1045509  }
  0x1c   :  { %1525 = vmatmul.mubr.msk.bf16.vlgmr.msra.gmra.mrb[0].mxu0 %vm99_vm3, %v56_v10  ;;  %v63_v22 = vor.u32 %v61_v13, %v60_v17  ;;  %v70_v26 = vor.u32 %v68_v21, %v67_v20  ;;  %v79_v27 = vor.u32 %v78_v24, %v58_v12  ;;  %v81_v31 = vor.u32 %v80_v30, %v65_v16  ;;  %v331_v17 = vld [vmem:[%s2042_s2] sm:$0x1] }
  0x1d   :  { %1529 = vmatpush3.bf16.msra.mxu0 %v172_v15  ;;  %v339_v15 = vlaneseq }
  0x1e   :  { %v76_v23 = vsel %vm1850_vm7, 0, %v63_v22  ;;  %1534 = vmatprep.subr.bf16.mxu0 %v238_v18  ;;  %v77_v28 = vsel %vm1850_vm7, 0, %v70_v26  ;;  %v87_v29 = vsel %vm1860_vm8, %v79_v27, 0  ;;  %v88_v32 = vsel %vm1860_vm8, %v81_v31, 0  ;;  %1543 = vmatpush3.bf16.msra.mxu1 %v1612_v34  ;;  %v335_v22 = vld [vmem:[%s2043_s3] sm:$0x1] }
  0x1f   :  { %1530 = vmatprep.mubr.msk.bf16.mxu0 %vm99_vm3, %v76_v23  ;;  %1544 = vmatprep.subr.bf16.mxu1 %v1613_v35  ;;  %v1899_v16 = vshrl.u32 %v339_v15, 7  ;;  %v1646_v15 = vld [vmem:[#allocation3 + $0x74] ss:$8 sps:$4 sm:$0xff]  }
  0x22   :  { %1545 = vmatpush3.bf16.msra.mxu1 %v1613_v35 }
  0x23   :  { %1546 = vmatprep.subr.bf16.mxu1 %v1614_v36 }
  0x26   :  { %1547 = vmatpush3.bf16.msra.mxu1 %v1614_v36 }
  0x27   :  { %1552 = vmatprep.subr.bf16.mxu1 %v1888_v37 }
  0x28   :  { %1531 = vmatmul.mubr.msk.bf16.vlgmr.msra.gmra.mrb[0].mxu0 %vm99_vm3, %v77_v28 }
  0x29   :  { %1535 = vmatpush3.bf16.msra.mxu0 %v238_v18  ;;  %1536 = vmatprep.mubr.msk.bf16.mxu0 %vm99_vm3, %v87_v29  ;;  %v1905_v18 = vsub.s32 0, %v1899_v16 }
  0x34   :  { %1537 = vmatmul.mubr.msk.bf16.vlgmr.msra.gmra.mrb[0].mxu0 %vm99_vm3, %v88_v32 }
 0x107   :  { %v1538_v38 = vpop.f32.mrb[0].mxu0 }
 0x108   :  { %v274_v39 = vpop.f32.mrb[1].mxu0  ;;  %v297_v45 = vsel %vm293_vm9, %v1538_v38, 0.0 }
 0x109   :  { %v1539_v40 = vpop.f32.mrb[2].mxu0  ;;  %v294_v42 = vsel %vm293_vm9, %v274_v39, 0.0 }
 0x10a   :  { %v277_v41 = vpop.f32.mrb[3].mxu0  ;;  %v299_v47 = vsel %vm293_vm9, %v1539_v40, 0.0 }
 0x10b   :  { %v295_v43 = vsel %vm293_vm9, %v277_v41, 0.0 }
 0x10c   :  { %v296_v44 = vadd.f32 %v295_v43, %v294_v42 }
 0x10e   :  { %v298_v46 = vadd.f32 %v297_v45, %v296_v44 }
 0x110   :  { %v300_v48 = vadd.f32 %v299_v47, %v298_v46  ;;  %v1616_v47 = vld [vmem:[%s2044_s4 + $0x8] sm:$0xff]  }
 0x112   :  { %v301_v49 = vrot.slane %v300_v48, 4 }
 0x114   :  { %v302_v50 = vadd.f32 %v301_v49, %v300_v48 }
 0x116   :  { %v303_v51 = vrot.slane %v302_v50, 2 }
 0x118   :  { %v304_v52 = vadd.f32 %v303_v51, %v302_v50 }
 0x11a   :  { %v305_v53 = vrot.slane %v304_v52, 1 }
 0x11c   :  { %v306_v54 = vadd.f32 %v305_v53, %v304_v52 }
 0x11e   :  { %v308_v55 = vmul.f32 0.03125, %v306_v54  ;;  %v1619_v54 = vld [vmem:[%s2044_s4 + $0x40] sm:$0xff]  }
 0x120   :  { %v309_v56 = vsub.f32 %v274_v39, %v308_v55  ;;  %v310_v57 = vsub.f32 %v277_v41, %v308_v55  ;;  %v311_v58 = vsub.f32 %v1538_v38, %v308_v55  ;;  %v312_v59 = vsub.f32 %v1539_v40, %v308_v55 }
 0x122   :  { %v313_v60 = vmul.f32 %v309_v56, %v309_v56  ;;  %v314_v61 = vmul.f32 %v310_v57, %v310_v57  ;;  %v315_v62 = vmul.f32 %v311_v58, %v311_v58  ;;  %v316_v63 = vmul.f32 %v312_v59, %v312_v59  ;;  %v1620_v57 = vld [vmem:[%s2044_s4 + $0x48] sm:$0xff]  }
 0x124   :  { %v317_v0 = vsel %vm293_vm9, %v313_v60, 0.0  ;;  %v318_v1 = vsel %vm293_vm9, %v314_v61, 0.0  ;;  %v320_v3 = vsel %vm293_vm9, %v315_v62, 0.0  ;;  %v322_v5 = vsel %vm293_vm9, %v316_v63, 0.0  ;;  %v1621_v60 = vld [vmem:[%s2044_s4 + $0x50] sm:$0xff]   ;;  %v1622_v61 = vld [vmem:[%s2044_s4 + $0x58] sm:$0xff]  }
 0x125   :  { %v319_v2 = vadd.f32 %v318_v1, %v317_v0  ;;  %v1625_v1 = vld [vmem:[#allocation3 + $0x4] ss:$8 sps:$4 sm:$0xff]  }
 0x126   :  { %1063 = vmatprep.subr.bf16.mxu0 %v1625_v1 }
 0x127   :  { %v321_v4 = vadd.f32 %v320_v3, %v319_v2  ;;  %v1623_v2 = vld [vmem:[#allocation3] ss:$8 sps:$4 sm:$0xff]   ;;  %v1628_v3 = vld [vmem:[#allocation3 + $0x14] ss:$8 sps:$4 sm:$0xff]  }
 0x128   :  { %1064 = vmatpush1.bf16.msra.mxu0 %v1623_v2 }
 0x129   :  { %v323_v6 = vadd.f32 %v322_v5, %v321_v4  ;;  %v1626_v4 = vld [vmem:[#allocation3 + $0x10] ss:$8 sps:$4 sm:$0xff]   ;;  %1065 = vmatprep.subr.bf16.mxu0 %v1628_v3  ;;  %v1631_v5 = vld [vmem:[#allocation3 + $0x24] ss:$8 sps:$4 sm:$0xff]  }
 0x12b   :  { %v324_v7 = vrot.slane %v323_v6, 4 }
 0x12c   :  { %1066 = vmatpush1.bf16.msra.mxu0 %v1626_v4 }
 0x12d   :  { %v325_v8 = vadd.f32 %v324_v7, %v323_v6  ;;  %v1629_v6 = vld [vmem:[#allocation3 + $0x20] ss:$8 sps:$4 sm:$0xff]   ;;  %1067 = vmatprep.subr.bf16.mxu0 %v1631_v5  ;;  %v1634_v7 = vld [vmem:[#allocation3 + $0x34] ss:$8 sps:$4 sm:$0xff]  }
 0x12f   :  { %v326_v9 = vrot.slane %v325_v8, 2 }
 0x130   :  { %1068 = vmatpush1.bf16.msra.mxu0 %v1629_v6 }
 0x131   :  { %v327_v10 = vadd.f32 %v326_v9, %v325_v8  ;;  %v1632_v8 = vld [vmem:[#allocation3 + $0x30] ss:$8 sps:$4 sm:$0xff]   ;;  %1069 = vmatprep.subr.bf16.mxu0 %v1634_v7  ;;  %v1637_v9 = vld [vmem:[#allocation3 + $0x44] ss:$8 sps:$4 sm:$0xff]  }
 0x133   :  { %v328_v11 = vrot.slane %v327_v10, 1 }
 0x134   :  { %1070 = vmatpush1.bf16.msra.mxu0 %v1632_v8 }
 0x135   :  { %v329_v12 = vadd.f32 %v328_v11, %v327_v10  ;;  %v1635_v10 = vld [vmem:[#allocation3 + $0x40] ss:$8 sps:$4 sm:$0xff]   ;;  %1071 = vmatprep.subr.bf16.mxu0 %v1637_v9  ;;  %v1640_v11 = vld [vmem:[#allocation3 + $0x54] ss:$8 sps:$4 sm:$0xff]  }
 0x137   :  { %v330_v13 = vmul.f32 0.03125, %v329_v12  ;;  %v1638_v12 = vld [vmem:[#allocation3 + $0x50] ss:$8 sps:$4 sm:$0xff]  }
 0x138   :  { %1072 = vmatpush1.bf16.msra.mxu0 %v1635_v10 }
 0x139   :  { %v332_v14 = vadd.f32 1e-05, %v330_v13  ;;  %1073 = vmatprep.subr.bf16.mxu0 %v1640_v11  ;;  %v1643_v13 = vld [vmem:[#allocation3 + $0x64] ss:$8 sps:$4 sm:$0xff]  }
 0x13b   :  { %1695 = vrsqrt.f32 %v332_v14  ;;  %v1641_v14 = vld [vmem:[#allocation3 + $0x60] ss:$8 sps:$4 sm:$0xff]  }
 0x13c   :  { %1074 = vmatpush1.bf16.msra.mxu0 %v1638_v12 }
 0x13d   :  { %1075 = vmatprep.subr.bf16.mxu0 %v1643_v13 }
 0x140   :  { %1076 = vmatpush1.bf16.msra.mxu0 %v1641_v14 }
 0x141   :  { %1077 = vmatprep.subr.bf16.mxu0 %v1646_v15 }
 0x145   :  { %v1696_v20 = vpop.eup %1695 }
 0x146   :  { %v334_v21 = vmul.f32 %v1696_v20, %v331_v17  ;;  %v1644_v17 = vld [vmem:[#allocation3 + $0x70] ss:$8 sps:$4 sm:$0xff]   ;;  %v1649_v20 = vld [vmem:[#allocation3 + $0x84] ss:$8 sps:$4 sm:$0xff]  }
 0x147   :  { %1078 = vmatpush1.bf16.msra.mxu0 %v1644_v17 }
 0x148   :  { %v336_v23 = vmul.f32 %v334_v21, %v308_v55  ;;  %v342_v24 = vrot.slane %v334_v21, %v1905_v18  ;;  %v1652_v21 = vld [vmem:[#allocation3 + $0x104] ss:$8 sps:$4 sm:$0xff]   ;;  %1079 = vmatprep.subr.bf16.mxu0 %v1649_v20 }
 0x14a   :  { %v337_v26 = vsub.f32 %v335_v22, %v336_v23  ;;  %v345_v27 = vmul.f32 %v342_v24, %v277_v41  ;;  %v344_v28 = vmul.f32 %v342_v24, %v274_v39  ;;  %v346_v29 = vmul.f32 %v1538_v38, %v342_v24  ;;  %v1647_v22 = vld [vmem:[#allocation3 + $0x80] ss:$8 sps:$4 sm:$0xff]  }
 0x14b   :  { %v347_v30 = vmul.f32 %v1539_v40, %v342_v24  ;;  %v1617_v40 = vld [vmem:[%s2044_s4 + $0x10] sm:$0xff]   ;;  %1080 = vmatpush1.bf16.msra.mxu0 %v1647_v22  ;;  %v1655_v24 = vld [vmem:[#allocation3 + $0x94] ss:$8 sps:$4 sm:$0xff]  }
 0x14c   :  { %v352_v31 = vrot.slane %v337_v26, %v1905_v18  ;;  %v1650_v23 = vld [vmem:[#allocation3 + $0x100] ss:$8 sps:$4 sm:$0xff]   ;;  %v1658_v26 = vld [vmem:[#allocation3 + $0x114] ss:$8 sps:$4 sm:$0xff]   ;;  %1081 = vmatprep.subr.bf16.mxu0 %v1655_v24 }
 0x14e   :  { %v355_v32 = vadd.f32 %v352_v31, %v345_v27  ;;  %v354_v33 = vadd.f32 %v352_v31, %v344_v28  ;;  %v356_v34 = vadd.f32 %v352_v31, %v346_v29  ;;  %v357_v35 = vadd.f32 %v352_v31, %v347_v30  ;;  %v1653_v27 = vld [vmem:[#allocation3 + $0x90] ss:$8 sps:$4 sm:$0xff]   ;;  %v1661_v29 = vld [vmem:[#allocation3 + $0xa4] ss:$8 sps:$4 sm:$0xff]   ;;  %v1659_v31 = vld [vmem:[#allocation3 + $0xa0] ss:$8 sps:$4 sm:$0xff]  }
 0x14f   :  { %v1656_v28 = vld [vmem:[#allocation3 + $0x110] ss:$8 sps:$4 sm:$0xff]   ;;  %1082 = vmatpush1.bf16.msra.mxu0 %v1653_v27  ;;  %v1664_v30 = vld [vmem:[#allocation3 + $0x124] ss:$8 sps:$4 sm:$0xff]  }
 0x150   :  { %v358_v36 = vmax.f32 %v354_v33, 0.0  ;;  %v359_v42 = vmax.f32 %v355_v32, 0.0  ;;  %v360_v43 = vmax.f32 %v356_v34, 0.0  ;;  %v361_v44 = vmax.f32 %v357_v35, 0.0  ;;  %v1662_v32 = vld [vmem:[#allocation3 + $0x120] ss:$8 sps:$4 sm:$0xff]   ;;  %1083 = vmatprep.subr.bf16.mxu0 %v1661_v29 }
 0x151   :  { %v1667_v33 = vld [vmem:[#allocation3 + $0xb4] ss:$8 sps:$4 sm:$0xff]   ;;  %v1665_v35 = vld [vmem:[#allocation3 + $0xb0] ss:$8 sps:$4 sm:$0xff]  }
 0x152   :  { %v362_v45 = vpack.c.bf16 %v359_v42, %v358_v36  ;;  %v363_v46 = vpack.c.bf16 %v361_v44, %v360_v43  ;;  %v1670_v34 = vld [vmem:[#allocation3 + $0x134] ss:$8 sps:$4 sm:$0xff]   ;;  %v1668_v36 = vld [vmem:[#allocation3 + $0x130] ss:$8 sps:$4 sm:$0xff]   ;;  %v1673_v42 = vld [vmem:[#allocation3 + $0xc4] ss:$8 sps:$4 sm:$0xff]  }
 0x153   :  { %1084 = vmatpush1.bf16.msra.mxu0 %v1659_v31  ;;  %v1676_v43 = vld [vmem:[#allocation3 + $0x144] ss:$8 sps:$4 sm:$0xff]   ;;  %v1671_v44 = vld [vmem:[#allocation3 + $0xc0] ss:$8 sps:$4 sm:$0xff]   ;;  %v683_v27 = vld [vmem:[%s2045_s5] sm:$0x1] }
 0x154   :  { %v365_v41 = vshrl.u32 %v362_v45, 16  ;;  %1548 = vmatprep.mubr.msk.bf16.mxu1 %vm293_vm9, %v362_v45  ;;  %v368_v39 = vshll.u32 %v362_v45, 16  ;;  %v372_v49 = vshrl.u32 %v363_v46, 16  ;;  %v375_v53 = vshll.u32 %v363_v46, 16  ;;  %1085 = vmatprep.subr.bf16.mxu0 %v1667_v33  ;;  %v1674_v45 = vld [vmem:[#allocation3 + $0x140] ss:$8 sps:$4 sm:$0xff]  }
 0x155   :  { %1549 = vmatmul.mubr.msk.bf16.vlgmr.msra.gmra.mrb[0].mxu1 %vm293_vm9, %v363_v46  ;;  %v1679_v46 = vld [vmem:[#allocation3 + $0xd4] ss:$8 sps:$4 sm:$0xff]  }
 0x156   :  { %1553 = vmatpush3.bf16.msra.mxu1 %v1888_v37  ;;  %v367_v38 = vrot.slane %v365_v41, 7  ;;  %v1618_v37 = vld [vmem:[%s2044_s4 + $0x18] sm:$0xff]   ;;  %v374_v51 = vrot.slane %v372_v49, 7  ;;  %v382_v52 = vrot.slane %v368_v39, 1  ;;  %v384_v62 = vrot.slane %v375_v53, 1 }
 0x157   :  { %1554 = vmatprep.subr.bf16.mxu1 %v1616_v47  ;;  %1086 = vmatpush1.bf16.msra.mxu0 %v1665_v35 }
 0x158   :  { %v370_v48 = vor.u32 %v368_v39, %v367_v38  ;;  %v377_v55 = vor.u32 %v375_v53, %v374_v51  ;;  %v383_v56 = vor.u32 %v382_v52, %v365_v41  ;;  %v385_v63 = vor.u32 %v384_v62, %v372_v49  ;;  %1087 = vmatprep.subr.bf16.mxu0 %v1673_v42  ;;  %v1677_v41 = vld [vmem:[#allocation3 + $0xd0] ss:$8 sps:$4 sm:$0xff]   ;;  %v1685_v39 = vld [vmem:[#allocation3 + $0xe4] ss:$8 sps:$4 sm:$0xff]   ;;  %v1686_v49 = vld [vmem:[#allocation3 + $0x160] ss:$8 sps:$4 sm:$0xff]  }
 0x159   :  { %v1680_v38 = vld [vmem:[#allocation3 + $0x150] ss:$8 sps:$4 sm:$0xff]   ;;  %v1755_v53 = vmov 0  }
 0x15a   :  { %1555 = vmatpush3.bf16.msra.mxu1 %v1616_v47  ;;  %v380_v50 = vsel %vm1850_vm7, 0, %v370_v48  ;;  %v381_v58 = vsel %vm1850_vm7, 0, %v377_v55  ;;  %v388_v59 = vsel %vm1860_vm8, %v383_v56, 0  ;;  %v389_v0 = vsel %vm1860_vm8, %v385_v63, 0  ;;  %v1682_v47 = vld [vmem:[#allocation3 + $0x154] ss:$8 sps:$4 sm:$0xff]  }
 0x15b   :  { %1560 = vmatprep.mubr.msk.bf16.mxu1 %vm293_vm9, %v380_v50  ;;  %1556 = vmatprep.subr.bf16.mxu1 %v1617_v40  ;;  %v1683_v48 = vld [vmem:[#allocation3 + $0xe0] ss:$8 sps:$4 sm:$0xff]   ;;  %v1691_v50 = vld [vmem:[#allocation3 + $0xf4] ss:$8 sps:$4 sm:$0xff]   ;;  %v1689_v51 = vld [vmem:[#allocation3 + $0xf0] ss:$8 sps:$4 sm:$0xff]  }
 0x15c   :  { %1088 = vmatpush1.bf16.msra.mxu0 %v1671_v44  ;;  %v1692_v52 = vld [vmem:[#allocation3 + $0x170] ss:$8 sps:$4 sm:$0xff]  }
 0x15d   :  { %1089 = vmatprep.subr.bf16.mxu0 %v1679_v46 }
 0x15e   :  { %1557 = vmatpush3.bf16.msra.mxu1 %v1617_v40  ;;  %v1688_v40 = vld [vmem:[#allocation3 + $0x164] ss:$8 sps:$4 sm:$0xff]  }
 0x15f   :  { %1558 = vmatprep.subr.bf16.mxu1 %v1618_v37 }
 0x160   :  { %1090 = vmatpush1.bf16.msra.mxu0 %v1677_v41 }
 0x161   :  { %1091 = vmatprep.subr.bf16.mxu0 %v1685_v39 }
 0x162   :  { %1559 = vmatpush3.bf16.msra.mxu1 %v1618_v37  ;;  %v1694_v37 = vld [vmem:[#allocation3 + $0x174] ss:$8 sps:$4 sm:$0xff]  }
 0x163   :  { %1564 = vmatprep.subr.bf16.mxu1 %v1619_v54 }
 0x164   :  { %1092 = vmatpush1.bf16.msra.mxu0 %v1683_v48 }
 0x165   :  { %1561 = vmatmul.mubr.msk.bf16.vlgmr.msra.gmra.mrb[0].mxu1 %vm293_vm9, %v381_v58  ;;  %1093 = vmatprep.subr.bf16.mxu0 %v1691_v50 }
 0x166   :  { %1565 = vmatpush3.bf16.msra.mxu1 %v1619_v54  ;;  %1572 = vmatprep.mubr.msk.bf16.mxu1 %vm293_vm9, %v388_v59 }
 0x167   :  { %1566 = vmatprep.subr.bf16.mxu1 %v1620_v57 }
 0x168   :  { %1094 = vmatpush1.bf16.msra.mxu0 %v1689_v51 }
 0x16a   :  { %1567 = vmatpush3.bf16.msra.mxu1 %v1620_v57 }
 0x16b   :  { %1568 = vmatprep.subr.bf16.mxu1 %v1621_v60 }
 0x16e   :  { %1569 = vmatpush3.bf16.msra.mxu1 %v1621_v60 }
 0x16f   :  { %1570 = vmatprep.subr.bf16.mxu1 %v1622_v61 }
 0x172   :  { %1571 = vmatpush3.bf16.msra.mxu1 %v1622_v61 }
 0x173   :  { %1116 = vmatprep.subr.bf16.mxu1 %v1652_v21 }
 0x175   :  { %1573 = vmatmul.mubr.msk.bf16.vlgmr.msra.gmra.mrb[0].mxu1 %vm293_vm9, %v389_v0 }
 0x176   :  { %1117 = vmatpush1.bf16.msra.mxu1 %v1650_v23  ;;  %1148 = vmatprep.mubr.bf16.mxu1 %v1755_v53 }
 0x177   :  { %1118 = vmatprep.subr.bf16.mxu1 %v1658_v26 }
 0x17a   :  { %1119 = vmatpush1.bf16.msra.mxu1 %v1656_v28 }
 0x17b   :  { %1120 = vmatprep.subr.bf16.mxu1 %v1664_v30  ;;  %v687_v30 = vld [vmem:[%s2046_s6] sm:$0x1] }
 0x17e   :  { %1121 = vmatpush1.bf16.msra.mxu1 %v1662_v32 }
 0x17f   :  { %1122 = vmatprep.subr.bf16.mxu1 %v1670_v34 }
 0x182   :  { %1123 = vmatpush1.bf16.msra.mxu1 %v1668_v36 }
 0x183   :  { %1124 = vmatprep.subr.bf16.mxu1 %v1676_v43 }
 0x186   :  { %1125 = vmatpush1.bf16.msra.mxu1 %v1674_v45 }
 0x187   :  { %1126 = vmatprep.subr.bf16.mxu1 %v1682_v47 }
 0x18a   :  { %1127 = vmatpush1.bf16.msra.mxu1 %v1680_v38 }
 0x18b   :  { %1128 = vmatprep.subr.bf16.mxu1 %v1688_v40 }
 0x18e   :  { %1129 = vmatpush1.bf16.msra.mxu1 %v1686_v49 }
 0x18f   :  { %1130 = vmatprep.subr.bf16.mxu1 %v1694_v37 }
 0x192   :  { %1131 = vmatpush1.bf16.msra.mxu1 %v1692_v52 }
 0x248   :  { %v1574_v54 = vpop.f32.mrb[0].mxu1 }
 0x249   :  { %v636_v55 = vpop.f32.mrb[1].mxu1 }
 0x24a   :  { %v1575_v56 = vpop.f32.mrb[2].mxu1 }
 0x24b   :  { %v639_v57 = vpop.f32.mrb[3].mxu1 }
 0x24c   :  { %v655_v58 = vadd.f32 %v639_v57, %v636_v55 }
 0x24e   :  { %v656_v59 = vadd.f32 %v1574_v54, %v655_v58 }
 0x250   :  { %v657_v60 = vadd.f32 %v1575_v56, %v656_v59 }
 0x252   :  { %v658_v61 = vrot.slane %v657_v60, 4 }
 0x254   :  { %v659_v62 = vadd.f32 %v658_v61, %v657_v60  ;;  %v737_v60 = vld [vmem:[#allocation2 + $0x18] sm:$0xff]  ;;  %v754_v61 = vld [vmem:[#allocation2 + $0x10] sm:$0xff] }
 0x256   :  { %v660_v63 = vrot.slane %v659_v62, 2 }
 0x258   :  { %v661_v0 = vadd.f32 %v660_v63, %v659_v62  ;;  %v757_v62 = vld [vmem:[#allocation2 + $0x28] sm:$0xff] }
 0x25a   :  { %v662_v1 = vrot.slane %v661_v0, 1 }
 0x25c   :  { %v663_v2 = vadd.f32 %v662_v1, %v661_v0 }
 0x25e   :  { %v664_v3 = vmul.f32 0.03125, %v663_v2 }
 0x260   :  { %v665_v4 = vsub.f32 %v636_v55, %v664_v3  ;;  %v666_v5 = vsub.f32 %v639_v57, %v664_v3  ;;  %v667_v6 = vsub.f32 %v1574_v54, %v664_v3  ;;  %v668_v7 = vsub.f32 %v1575_v56, %v664_v3 }
 0x262   :  { %v669_v8 = vmul.f32 %v665_v4, %v665_v4  ;;  %v670_v9 = vmul.f32 %v666_v5, %v666_v5  ;;  %v671_v10 = vmul.f32 %v667_v6, %v667_v6  ;;  %v672_v12 = vmul.f32 %v668_v7, %v668_v7 }
 0x264   :  { %v673_v11 = vadd.f32 %v670_v9, %v669_v8 }
 0x266   :  { %v674_v13 = vadd.f32 %v673_v11, %v671_v10 }
 0x268   :  { %v675_v14 = vadd.f32 %v674_v13, %v672_v12 }
 0x26a   :  { %v676_v15 = vrot.slane %v675_v14, 4 }
 0x26c   :  { %v677_v17 = vadd.f32 %v676_v15, %v675_v14 }
 0x26e   :  { %v678_v20 = vrot.slane %v677_v17, 2 }
 0x270   :  { %v679_v21 = vadd.f32 %v678_v20, %v677_v17 }
 0x272   :  { %v680_v22 = vrot.slane %v679_v21, 1 }
 0x274   :  { %v681_v23 = vadd.f32 %v680_v22, %v679_v21 }
 0x276   :  { %v682_v24 = vmul.f32 0.03125, %v681_v23 }
 0x278   :  { %v684_v26 = vadd.f32 1e-05, %v682_v24 }
 0x27a   :  { %1697 = vrsqrt.f32 %v684_v26 }
 0x284   :  { %v1698_v28 = vpop.eup %1697 }
 0x285   :  { %v686_v29 = vmul.f32 %v1698_v28, %v683_v27 }
 0x287   :  { %v688_v31 = vmul.f32 %v686_v29, %v664_v3  ;;  %v694_v32 = vrot.slane %v686_v29, %v1905_v18 }
 0x289   :  { %v689_v33 = vsub.f32 %v687_v30, %v688_v31  ;;  %v696_v34 = vmul.f32 %v694_v32, %v636_v55  ;;  %v697_v35 = vmul.f32 %v694_v32, %v639_v57  ;;  %v698_v36 = vmul.f32 %v1574_v54, %v694_v32  ;;  %v734_v57 = vld [vmem:[#allocation2] sm:$0xff] }
 0x28a   :  { %v699_v42 = vmul.f32 %v1575_v56, %v694_v32 }
 0x28b   :  { %v704_v43 = vrot.slane %v689_v33, %v1905_v18 }
 0x28d   :  { %v706_v44 = vadd.f32 %v704_v43, %v696_v34  ;;  %v707_v45 = vadd.f32 %v704_v43, %v697_v35  ;;  %v708_v46 = vadd.f32 %v704_v43, %v698_v36  ;;  %v709_v47 = vadd.f32 %v704_v43, %v699_v42 }
 0x28f   :  { %v710_v41 = vmax.f32 %v706_v44, 0.0  ;;  %v711_v38 = vmax.f32 %v707_v45, 0.0  ;;  %v712_v39 = vmax.f32 %v708_v46, 0.0  ;;  %v713_v40 = vmax.f32 %v709_v47, 0.0 }
 0x291   :  { %v714_v48 = vpack.c.bf16 %v711_v38, %v710_v41  ;;  %v715_v49 = vpack.c.bf16 %v713_v40, %v712_v39 }
 0x293   :  { %v717_v50 = vshrl.u32 %v714_v48, 16  ;;  %v720_v37 = vshll.u32 %v714_v48, 16  ;;  %v724_v51 = vshrl.u32 %v715_v49, 16  ;;  %v727_v52 = vshll.u32 %v715_v49, 16  ;;  %1095 = vmatprep.mubr.bf16.mxu0 %v714_v48 }
 0x295   :  { %v719_v55 = vrot.slane %v717_v50, 7  ;;  %v726_v56 = vrot.slane %v724_v51, 7  ;;  %v748_v58 = vrot.slane %v720_v37, 1  ;;  %v750_v59 = vrot.slane %v727_v52, 1 }
 0x297   :  { %v722_v63 = vor.u32 %v720_v37, %v719_v55  ;;  %v729_v0 = vor.u32 %v727_v52, %v726_v56  ;;  %v749_v1 = vor.u32 %v748_v58, %v717_v50  ;;  %v751_v2 = vor.u32 %v750_v59, %v724_v51 }
 0x299   :  { %v735_v3 = vsel %vm1958_vm11, %v722_v63, %v734_v57  ;;  %v738_v4 = vsel %vm1958_vm11, %v729_v0, %v737_v60  ;;  %v755_v5 = vsel %vm1860_vm8, %v749_v1, %v754_v61  ;;  %v758_v6 = vsel %vm1860_vm8, %v751_v2, %v757_v62 }
 0x29a   :  { %736 = vst [vmem:[#allocation2] sm:$0xff] %v735_v3  ;;  %756 = vst [vmem:[#allocation2 + $0x10] sm:$0xff] %v755_v5 }
 0x29b   :  { %759 = vst [vmem:[#allocation2 + $0x28] sm:$0xff] %v758_v6  ;;  %739 = vst [vmem:[#allocation2 + $0x18] sm:$0xff] %v738_v4 }
 0x2a1   :  { %v740_v7 = vld [vmem:[#allocation2] sm:$0x1]  ;;  %v763_v8 = vld [vmem:[#allocation2 + $0x10] sm:$0x80] }
 0x2a2   :  { %v766_v9 = vld [vmem:[#allocation2 + $0x28] sm:$0x80]  ;;  %v741_v10 = vsel %vm1850_vm7, 0, %v740_v7  ;;  %v764_v11 = vsel %vm762_vm14, 0, %v763_v8  ;;  %v743_v13 = vld [vmem:[#allocation2 + $0x18] sm:$0x1] }
 0x2a3   :  { %v767_v12 = vsel %vm762_vm14, 0, %v766_v9  ;;  %742 = vst [vmem:[#allocation2] sm:$0x1] %v741_v10  ;;  %765 = vst [vmem:[#allocation2 + $0x10] sm:$0x80] %v764_v11  ;;  %v744_v25 = vsel %vm1850_vm7, 0, %v743_v13 }
 0x2a4   :  { %768 = vst [vmem:[#allocation2 + $0x28] sm:$0x80] %v767_v12  ;;  %745 = vst [vmem:[#allocation2 + $0x18] sm:$0x1] %v744_v25 }
 0x2aa   :  { %v769_v14 = vld [vmem:[#allocation2] sm:$0xff]  ;;  %v771_v15 = vld [vmem:[#allocation2 + $0x10] sm:$0xff] }
 0x2ab   :  { %1096 = vmatmul.mubr.bf16.vlgmr.msra.gmra.mrb[4].mxu0 %v769_v14  ;;  %1149 = vmatmul.mubr.bf16.vlgmr.msra.gmra.mrb[4].mxu1 %v771_v15  ;;  %v772_v17 = vld [vmem:[#allocation2 + $0x18] sm:$0xff]  ;;  %v774_v20 = vld [vmem:[#allocation2 + $0x28] sm:$0xff] }
 0x2ac   :  { %1105 = vmatprep.mubr.bf16.mxu0 %v715_v49  ;;  %1158 = vmatprep.mubr.bf16.mxu1 %v1755_v53 }
 0x2b3   :  { %1106 = vmatmul.mubr.bf16.gmra.mrb[8].mxu0 %v772_v17  ;;  %1159 = vmatmul.mubr.bf16.gmra.mrb[8].mxu1 %v774_v20 }
 0x37e   :  { %v1097_v21 = vpop.f32.mrb[4].mxu0  ;;  %v1150_v22 = vpop.f32.mrb[4].mxu1 }
 0x37f   :  { %v1976_v23 = vadd.f32 %v1150_v22, %v1097_v21  ;;  %v1099_v24 = vpop.f32.mrb[5].mxu0  ;;  %v1152_v26 = vpop.f32.mrb[5].mxu1 }
 0x380   :  { %v1978_v19 = vadd.f32 %v1152_v26, %v1099_v24  ;;  %v1101_v27 = vpop.f32.mrb[6].mxu0  ;;  %v1154_v28 = vpop.f32.mrb[6].mxu1 }
 0x381   :  { %v1980_v29 = vadd.f32 %v1154_v28, %v1101_v27  ;;  %v1103_v30 = vpop.f32.mrb[7].mxu0  ;;  %v1156_v31 = vpop.f32.mrb[7].mxu1 }
 0x382   :  { %v1982_v32 = vadd.f32 %v1156_v31, %v1103_v30 }
 0x383   :  { %v1169_v34 = vadd.f32 %v1980_v29, %v1976_v23 }
 0x384   :  { %v1178_v43 = vadd.f32 %v1982_v32, %v1978_v19 }
 0x386   :  { %v1107_v53 = vpop.f32.mrb[8].mxu0  ;;  %v1160_v33 = vpop.f32.mrb[8].mxu1 }
 0x387   :  { %v1986_v35 = vadd.f32 %v1160_v33, %v1107_v53  ;;  %v1109_v36 = vpop.f32.mrb[9].mxu0  ;;  %v1162_v42 = vpop.f32.mrb[9].mxu1 }
 0x388   :  { %v1990_v44 = vadd.f32 %v1162_v42, %v1109_v36  ;;  %v1111_v45 = vpop.f32.mrb[10].mxu0  ;;  %v1164_v46 = vpop.f32.mrb[10].mxu1 }
 0x389   :  { %v1170_v47 = vadd.f32 %v1169_v34, %v1986_v35  ;;  %v1993_v41 = vadd.f32 %v1164_v46, %v1111_v45  ;;  %v1113_v38 = vpop.f32.mrb[11].mxu0  ;;  %v1166_v39 = vpop.f32.mrb[11].mxu1 }
 0x38a   :  { %v1179_v40 = vadd.f32 %v1178_v43, %v1990_v44  ;;  %v1996_v48 = vadd.f32 %v1166_v39, %v1113_v38 }
 0x38b   :  { %v1171_v49 = vadd.f32 %v1170_v47, %v1993_v41 }
 0x38c   :  { %v1180_v50 = vadd.f32 %v1179_v40, %v1996_v48 }
 0x38d   :  { %v1172_v37 = vrot.slane %v1171_v49, 4 }
 0x38e   :  { %v1181_v51 = vrot.slane %v1180_v50, 4 }
 0x38f   :  { %v1173_v52 = vadd.f32 %v1172_v37, %v1171_v49  ;;  %v1756_v49 = vmov 1966171168  }
 0x390   :  { %v1182_v54 = vadd.f32 %v1181_v51, %v1180_v50  ;;  %v1234_v50 = vunpack.c.l.s4 %v1756_v49  ;;  %v1757_v49 = vmov 1983009808  }
 0x391   :  { %v1174_v55 = vrot.slane %v1173_v52, 2 }
 0x392   :  { %v1183_v56 = vrot.slane %v1182_v54, 2  ;;  %v1235_v37 = vunpack.c.0.s8 %v1234_v50  ;;  %v1356_v50 = vunpack.c.l.s4 %v1757_v49 }
 0x393   :  { %v1175_v57 = vadd.f32 %v1174_v55, %v1173_v52 }
 0x394   :  { %v1184_v58 = vadd.f32 %v1183_v56, %v1182_v54  ;;  %v1238_v52 = vsub.s32 %v1235_v37, %v1899_v16 }
 0x395   :  { %v1176_v59 = vrot.slane %v1175_v57, 1 }
 0x396   :  { %v1185_v60 = vrot.slane %v1184_v58, 1 }
 0x397   :  { %v1177_v61 = vadd.f32 %v1176_v59, %v1175_v57  ;;  %v1225_v57 = vld [vmem:[%s2048_s8] sm:$0x3]  ;;  %v1257_v59 = vsub.s32 1, %v1899_v16  ;;  %s1758_s8 = smov [#allocation6]  }
 0x398   :  { %v1186_v62 = vadd.f32 %v1185_v60, %v1184_v58 }
 0x399   :  { %v1187_v63 = vmul.f32 0.03125, %v1177_v61 }
 0x39a   :  { %v1188_v0 = vmul.f32 0.03125, %v1186_v62 }
 0x39b   :  { %v1189_v1 = vsub.f32 %v1976_v23, %v1187_v63  ;;  %v1191_v2 = vsub.f32 %v1980_v29, %v1187_v63  ;;  %v1193_v3 = vsub.f32 %v1986_v35, %v1187_v63  ;;  %v1195_v7 = vsub.f32 %v1993_v41, %v1187_v63 }
 0x39c   :  { %v1190_v4 = vsub.f32 %v1978_v19, %v1188_v0  ;;  %v1192_v5 = vsub.f32 %v1982_v32, %v1188_v0  ;;  %v1194_v6 = vsub.f32 %v1990_v44, %v1188_v0  ;;  %v1196_v10 = vsub.f32 %v1996_v48, %v1188_v0 }
 0x39d   :  { %v1197_v8 = vmul.f32 %v1189_v1, %v1189_v1  ;;  %v1199_v9 = vmul.f32 %v1191_v2, %v1191_v2  ;;  %v1201_v13 = vmul.f32 %v1193_v3, %v1193_v3  ;;  %v1203_v17 = vmul.f32 %v1195_v7, %v1195_v7 }
 0x39e   :  { %v1198_v11 = vmul.f32 %v1190_v4, %v1190_v4  ;;  %v1200_v12 = vmul.f32 %v1192_v5, %v1192_v5  ;;  %v1202_v14 = vmul.f32 %v1194_v6, %v1194_v6  ;;  %v1204_v21 = vmul.f32 %v1196_v10, %v1196_v10  ;;  %v1249_v5 = vld [vmem:[%s2049_s9] sm:$0x3]  ;;  %s1391_s9 = sshll.u32 %s1758_s8, 4  ;;  %s1392_s9 = int_to_ptr.vmem [resolvable:$true] %s1391_s9 }
 0x39f   :  { %v1205_v25 = vadd.f32 %v1199_v9, %v1197_v8  ;;  %s1725_s26 = scalar_lea.vmem %s1392_s9, 64  ;;  %p1730_p9 = scmp.lt.s32.totalorder %s1392_s9, %s1392_s9 }
 0x3a0   :  { %v1214_v15 = vadd.f32 %v1200_v12, %v1198_v11  ;;  %p1726_p8 = scmp.ne.s32.totalorder %s1392_s9, %s1725_s26  ;;  %p1731_p10 = scmp.lt.s32.totalorder %s1725_s26, %s1725_s26 }
 0x3a1   :  { %v1206_v20 = vadd.f32 %v1205_v25, %v1201_v13 }
 0x3a2   :  { %v1215_v22 = vadd.f32 %v1214_v15, %v1202_v14  ;;  %p1732_p11 = por %p1731_p10, %p1730_p9 }
 0x3a3   :  { %v1207_v24 = vadd.f32 %v1206_v20, %v1203_v17 }
 0x3a4   :  { %v1216_v26 = vadd.f32 %v1215_v22, %v1204_v21  ;;  %p1733_p12 = pnand %p1732_p11, %p1726_p8 }
 0x3a5   :  { %v1208_v27 = vrot.slane %v1207_v24, 4 }
 0x3a6   :  { %v1217_v28 = vrot.slane %v1216_v26, 4 }
 0x3a7   :  { %v1209_v30 = vadd.f32 %v1208_v27, %v1207_v24 }
 0x3a8   :  { %v1218_v31 = vadd.f32 %v1217_v28, %v1216_v26 }
 0x3a9   :  { %v1210_v53 = vrot.slane %v1209_v30, 2 }
 0x3aa   :  { %v1219_v33 = vrot.slane %v1218_v31, 2 }
 0x3ab   :  { %v1211_v34 = vadd.f32 %v1210_v53, %v1209_v30 }
 0x3ac   :  { %v1220_v36 = vadd.f32 %v1219_v33, %v1218_v31 }
 0x3ad   :  { %v1212_v42 = vrot.slane %v1211_v34, 1 }
 0x3ae   :  { %v1221_v43 = vrot.slane %v1220_v36, 1 }
 0x3af   :  { %v1213_v45 = vadd.f32 %v1212_v42, %v1211_v34 }
 0x3b0   :  { %v1222_v46 = vadd.f32 %v1221_v43, %v1220_v36 }
 0x3b1   :  { %v1223_v47 = vmul.f32 0.03125, %v1213_v45 }
 0x3b2   :  { %v1224_v38 = vmul.f32 0.03125, %v1222_v46 }
 0x3b3   :  { %v1226_v39 = vadd.f32 1e-05, %v1223_v47 }
 0x3b4   :  { %v1227_v40 = vadd.f32 1e-05, %v1224_v38 }
 0x3b5   :  { %1699 = vrsqrt.f32 %v1226_v39 }
 0x3b6   :  { %1701 = vrsqrt.f32 %v1227_v40 }
 0x3bf   :  { %v1700_v51 = vpop.eup %1699 }
 0x3c0   :  { %v1702_v54 = vpop.eup %1701 }
 0x3c1   :  { %v1232_v55 = vcombine.low %v1700_v51, %v1702_v54 }
 0x3c3   :  { %v1239_v56 = vrot.slane %v1232_v55, %v1238_v52 }
 0x3c5   :  { %v1246_v58 = vrot.slane %v1239_v56, %v1238_v52 }
 0x3c7   :  { %v1248_v60 = vmul.f32 %v1246_v58, %v1225_v57 }
 0x3c9   :  { %v1254_v61 = vrot.slane %v1248_v60, %v1905_v18  ;;  %v1258_v62 = vrot.slane %v1248_v60, %v1257_v59 }
 0x3cb   :  { %v1261_v1 = vmul.f32 %v1254_v61, %v1187_v63  ;;  %v1262_v2 = vmul.f32 %v1258_v62, %v1188_v0  ;;  %v1283_v8 = vmul.f32 %v1258_v62, %v1978_v19  ;;  %v1285_v9 = vmul.f32 %v1258_v62, %v1982_v32 }
 0x3cc   :  { %v1287_v10 = vmul.f32 %v1258_v62, %v1990_v44  ;;  %v1289_v11 = vmul.f32 %v1258_v62, %v1996_v48  ;;  %v1282_v0 = vmul.f32 %v1254_v61, %v1976_v23  ;;  %v1284_v13 = vmul.f32 %v1254_v61, %v1980_v29 }
 0x3cd   :  { %v1265_v3 = vcombine.low %v1261_v1, %v1262_v2  ;;  %v1286_v25 = vmul.f32 %v1254_v61, %v1986_v35  ;;  %v1288_v14 = vmul.f32 %v1254_v61, %v1993_v41 }
 0x3cf   :  { %v1272_v4 = vrot.slane %v1265_v3, %v1238_v52 }
 0x3d1   :  { %v1279_v6 = vrot.slane %v1272_v4, %v1238_v52 }
 0x3d3   :  { %v1281_v7 = vsub.f32 %v1249_v5, %v1279_v6 }
 0x3d5   :  { %v1294_v12 = vrot.slane %v1281_v7, %v1905_v18  ;;  %v1298_v63 = vrot.slane %v1281_v7, %v1257_v59  ;;  %v1357_v59 = vunpack.c.0.s8 %v1356_v50 }
 0x3d7   :  { %v1302_v15 = vadd.f32 %v1298_v63, %v1283_v8  ;;  %v1304_v17 = vadd.f32 %v1298_v63, %v1285_v9  ;;  %v1306_v19 = vadd.f32 %v1298_v63, %v1287_v10  ;;  %v1308_v20 = vadd.f32 %v1298_v63, %v1289_v11 }
 0x3d8   :  { %v1301_v32 = vadd.f32 %v1294_v12, %v1282_v0  ;;  %v1303_v21 = vadd.f32 %v1294_v12, %v1284_v13  ;;  %v1305_v44 = vadd.f32 %v1294_v12, %v1286_v25  ;;  %v1307_v22 = vadd.f32 %v1294_v12, %v1288_v14 }
 0x3d9   :  { %v1310_v48 = vmax.f32 %v1302_v15, 0.0  ;;  %v1312_v24 = vmax.f32 %v1304_v17, 0.0  ;;  %v1314_v18 = vmax.f32 %v1306_v19, 0.0  ;;  %v1316_v26 = vmax.f32 %v1308_v20, 0.0 }
 0x3da   :  { %v1309_v27 = vmax.f32 %v1301_v32, 0.0  ;;  %v1311_v23 = vmax.f32 %v1303_v21, 0.0  ;;  %v1313_v28 = vmax.f32 %v1305_v44, 0.0  ;;  %v1315_v29 = vmax.f32 %v1307_v22, 0.0 }
 0x3db   :  { %v1338_v30 = vadd.f32 %v1316_v26, %v1314_v18  ;;  %v1324_v35 = vadd.f32 %v1312_v24, %v1310_v48  ;;  %v1360_v6 = vsub.s32 %v1357_v59, %v1899_v16 }
 0x3dc   :  { %v1317_v31 = vadd.f32 %v1311_v23, %v1309_v27  ;;  %v1331_v41 = vadd.f32 %v1315_v29, %v1313_v28 }
 0x3dd   :  { %v1339_v53 = vrot.slane %v1338_v30, 4  ;;  %v1325_v33 = vrot.slane %v1324_v35, 4 }
 0x3de   :  { %v1318_v34 = vrot.slane %v1317_v31, 4  ;;  %v1332_v36 = vrot.slane %v1331_v41, 4 }
 0x3df   :  { %v1340_v42 = vadd.f32 %v1339_v53, %v1338_v30  ;;  %v1326_v43 = vadd.f32 %v1325_v33, %v1324_v35 }
 0x3e0   :  { %v1319_v45 = vadd.f32 %v1318_v34, %v1317_v31  ;;  %v1333_v46 = vadd.f32 %v1332_v36, %v1331_v41 }
 0x3e1   :  { %v1341_v47 = vrot.slane %v1340_v42, 2  ;;  %v1327_v38 = vrot.slane %v1326_v43, 2 }
 0x3e2   :  { %v1320_v39 = vrot.slane %v1319_v45, 2  ;;  %v1334_v40 = vrot.slane %v1333_v46, 2 }
 0x3e3   :  { %v1342_v37 = vadd.f32 %v1341_v47, %v1340_v42  ;;  %v1328_v51 = vadd.f32 %v1327_v38, %v1326_v43 }
 0x3e4   :  { %v1321_v52 = vadd.f32 %v1320_v39, %v1319_v45  ;;  %v1335_v54 = vadd.f32 %v1334_v40, %v1333_v46 }
 0x3e5   :  { %v1343_v55 = vrot.slane %v1342_v37, 1  ;;  %v1329_v56 = vrot.slane %v1328_v51, 1 }
 0x3e6   :  { %v1322_v57 = vrot.slane %v1321_v52, 1  ;;  %v1336_v58 = vrot.slane %v1335_v54, 1 }
 0x3e7   :  { %v1344_v60 = vadd.f32 %v1343_v55, %v1342_v37  ;;  %v1330_v61 = vadd.f32 %v1329_v56, %v1328_v51 }
 0x3e8   :  { %v1323_v62 = vadd.f32 %v1322_v57, %v1321_v52  ;;  %v1337_v1 = vadd.f32 %v1336_v58, %v1335_v54 }
 0x3e9   :  { %v1347_v2 = vmul.f32 0.0625, %v1330_v61  ;;  %v1349_v3 = vmul.f32 0.0625, %v1344_v60 }
 0x3ea   :  { %v1346_v4 = vmul.f32 0.0625, %v1323_v62  ;;  %v1348_v5 = vmul.f32 0.0625, %v1337_v1 }
 0x3ec   :  { %v1354_v7 = vcombine.low %v1346_v4, %v1347_v2  ;;  %v1362_v8 = vcombine.low %v1348_v5, %v1349_v3 }
 0x3ee   :  { %v1369_v9 = vrot.slane %v1362_v8, %v1360_v6  ;;  %v1361_v10 = vrot.slane %v1354_v7, %v1360_v6 }
 0x3f0   :  { %v1374_v11 = vrot.slane %v1369_v9, 7 }
 0x3f2   :  { %v1376_v12 = vsel %vm1375_vm15, %v1374_v11, %v1361_v10 }
 0x3f3   :  { %v1378_v63 = vsel %vm1377_vm0, %v1374_v11, %v1376_v12 }
 0x3f4   :  { %v1380_v0 = vsel %vm1379_vm1, %v1374_v11, %v1378_v63 }
 0x3f5   :  { %v1382_v13 = vsel %vm760_vm12, %v1374_v11, %v1380_v0 }
 0x3f6   :  { %1384 = vst [vmem:[#allocation6] sm:$0xf] %v1382_v13 }
 0x3f7   :  { %1736 = shalt.err (!%p1733_p12)
}
 0x3f8   :  { %s1737_s29 = scalar_lea.hbm %s2050_s10, 64 }
 0x3f9   :  { %p1738_p13 = scmp.ne.s32.totalorder %s2050_s10, %s1737_s29  ;;  %p1741_p0 = scmp.lt.u32.totalorder %s1737_s29, %s2050_s10 }
 0x3fb   :  { %p1743_p1 = pnand %p1741_p0, %p1738_p13 }
 0x3fd   :  { %1746 = shalt.err (!%p1743_p1)
}
 0x3fe   :  { %1394 = dma.vmem_to_hbm [thread:$0]  %s1392_s9, 64, %s2050_s10, [#allocation5]  }
 0x3ff   :  { %1749 = dma.done.wait [#allocation5], 64  }
 0x400   :  { %1750 = vsyncadd [#allocation5], 4294967232 }
 0x401   :  { %1398 = vsyncpa [#allocation4], 1 }
 0x402   :  { %1399 = vsyncpa [#allocation5], 1 }

</bundles_post_ra>
